<compile_context>
chip_gen: v7x
topology: tpu7x:2x2x1
jax: 0.10.0
libtpu: 0.0.40
codegen_flags: <defaults>
</compile_context>

<pallas_src>
import jax
import jax.numpy as jnp
from jax.experimental import pallas as pl
from jax.experimental.pallas import tpu as pltpu

_LANES = 128
_MAX_TILE_ROWS = 2048   # 2048 x 128 f32 = 1 MiB per input tile


def _make_vae_loss_kernel(tile_rows, acc_rows, total_rows, n_tiles, needs_mask):
    def kernel(x_ref, r_ref, mu_ref, lv_ref, out_ref, acc_ref):
        # program_id is only used at the top level (never inside pl.when bodies).
        t = pl.program_id(0)

        x = x_ref[...].astype(jnp.float32)
        r = r_ref[...].astype(jnp.float32)

        # PyTorch BCELoss clamps each log term at -100 (before any multiply).
        log_r = jnp.maximum(jnp.log(r), -100.0)
        log_1mr = jnp.maximum(jnp.log(1.0 - r), -100.0)
        # == x*log(r) + (1-x)*log(1-r), with one fewer mul/sub per element.
        term = log_1mr + x * (log_r - log_1mr)

        if needs_mask:
            # Last grid block extends past total_rows: zero out garbage rows.
            # The select also discards any NaN/Inf those rows produced above.
            row = jax.lax.broadcasted_iota(jnp.int32, (tile_rows, _LANES), 0)
            term = jnp.where(row + t * tile_rows < total_rows, term, 0.0)

        if tile_rows != acc_rows:
            # Fold the tile down to a vreg-scale partial sum with pure VPU adds;
            # the expensive cross-lane/sublane reduce happens only at the end.
            term = term.reshape(tile_rows // acc_rows, acc_rows, _LANES).sum(axis=0)

        @pl.when(t == 0)
        def _init():
            acc_ref[...] = term

        @pl.when(t > 0)
        def _accumulate():
            acc_ref[...] = acc_ref[...] + term

        @pl.when(t == n_tiles - 1)
        def _finalize():
            mu = mu_ref[...].astype(jnp.float32)
            lv = lv_ref[...].astype(jnp.float32)
            kl = 0.5 * jnp.sum(jnp.exp(lv) - lv + mu * mu - 1.0)
            out_ref[0, 0] = kl - jnp.sum(acc_ref[...])

    return kernel


def vae_loss(x, recons, mu, logvar):
    """Equivalent of VAELoss.forward: BCE(recons, x, reduction='sum') + KL."""
    n = x.size
    x_flat = x.reshape(-1)
    r_flat = recons.reshape(-1)

    # Zero-copy path when n % 128 == 0 (reshape of contiguous data is free).
    # Only a ragged sub-128 remainder gets padded; pad values x = r = 1
    # contribute exactly 0 to the BCE sum (clamp happens before the multiply).
    rem = n % _LANES
    if rem:
        pad = _LANES - rem
        x_flat = jnp.pad(x_flat, (0, pad), constant_values=1)
        r_flat = jnp.pad(r_flat, (0, pad), constant_values=1)
    rows = x_flat.size // _LANES
    x2d = x_flat.reshape(rows, _LANES)
    r2d = r_flat.reshape(rows, _LANES)

    # mu / logvar are tiny: one resident block, DMA'd once.
    mu2d = mu.reshape(1, -1)
    lv2d = logvar.reshape(1, -1)

    tile_rows = min(_MAX_TILE_ROWS, rows)
    n_tiles = pl.cdiv(rows, tile_rows)
    needs_mask = (rows % tile_rows) != 0

    # vreg-scale accumulator shape that evenly divides the tile.
    if tile_rows % 64 == 0:
        acc_rows = 64
    elif tile_rows % 8 == 0:
        acc_rows = 8
    else:
        acc_rows = tile_rows

    kernel = _make_vae_loss_kernel(tile_rows, acc_rows, rows, n_tiles, needs_mask)

    cost = pl.CostEstimate(
        flops=int(6 * n + 6 * mu.size),
        transcendentals=int(2 * n + mu.size),
        bytes_accessed=int(x.nbytes + recons.nbytes + mu.nbytes + logvar.nbytes + 4),
    )

    out = pl.pallas_call(
        kernel,
        out_shape=jax.ShapeDtypeStruct((1, 1), jnp.float32),
        grid_spec=pltpu.PrefetchScalarGridSpec(
            num_scalar_prefetch=0,
            grid=(n_tiles,),
            in_specs=[
                pl.BlockSpec((tile_rows, _LANES), lambda t: (t, 0)),
                pl.BlockSpec((tile_rows, _LANES), lambda t: (t, 0)),
                pl.BlockSpec(mu2d.shape, lambda t: (0, 0)),
                pl.BlockSpec(lv2d.shape, lambda t: (0, 0)),
            ],
            out_specs=pl.BlockSpec((1, 1), lambda t: (0, 0),
                                   memory_space=pltpu.MemorySpace.SMEM),
            scratch_shapes=[pltpu.VMEM((acc_rows, _LANES), jnp.float32)],
        ),
        compiler_params=pltpu.CompilerParams(
            dimension_semantics=("arbitrary",),
            vmem_limit_bytes=32 * 1024 * 1024,
        ),
        cost_estimate=cost,
    )(x2d, r2d, mu2d, lv2d)

    return out[0, 0]


def _reference(x, recons, mu, logvar):
    log_r = jnp.maximum(jnp.log(recons), -100.0)
    log_1mr = jnp.maximum(jnp.log(1.0 - recons), -100.0)
    bce = -jnp.sum(x * log_r + (1.0 - x) * log_1mr)
    kl = jnp.sum(-logvar + jnp.exp(logvar) + mu ** 2 - 1.0) / 2.0
    return bce + kl


if __name__ == "__main__":
    key = jax.random.PRNGKey(0)
    k1, k2, k3, k4 = jax.random.split(key, 4)

    B, C, H, W = 2, 4, 16, 16
    LATENT = 32

    # targets in [0, 1]; reconstructions strictly in (0, 1) via sigmoid
    x = jax.random.uniform(k1, (B, C, H, W), dtype=jnp.float32)
    recons = jax.nn.sigmoid(jax.random.normal(k2, (B, C, H, W), dtype=jnp.float32))
    mu = jax.random.normal(k3, (B, LATENT), dtype=jnp.float32)
    logvar = 0.1 * jax.random.normal(k4, (B, LATENT), dtype=jnp.float32)

    loss = jax.block_until_ready(vae_loss(x, recons, mu, logvar))

    ref = _reference(x, recons, mu, logvar)
    assert jnp.allclose(loss, ref, rtol=1e-4, atol=1e-2), (loss, ref)

    print("KERNEL_OK")
</pallas_src>

<mosaic_0001>
module attributes {stable_mosaic.version = 11 : i64} {
  func.func @kernel(%arg0: i32, %arg1: memref<16x128xf32, #tpu.memory_space<vmem>>, %arg2: memref<16x128xf32, #tpu.memory_space<vmem>>, %arg3: memref<1x64xf32, #tpu.memory_space<vmem>>, %arg4: memref<1x64xf32, #tpu.memory_space<vmem>>, %arg5: memref<1x1xf32, #tpu.memory_space<smem>>, %arg6: memref<8x128xf32, #tpu.memory_space<vmem>>) attributes {dimension_semantics = [#tpu.dimension_semantics<arbitrary>], iteration_bounds = array<i64: 1>, scalar_prefetch = 0 : i64, scratch_operands = 1 : i64, tpu.core_type = #tpu.core_type<tc>, window_params = [{transform_indices = @transform_0, window_bounds = array<i64: 16, 128>}, {transform_indices = @transform_1, window_bounds = array<i64: 16, 128>}, {pipeline_mode = #tpu.pipeline_mode<synchronous>, transform_indices = @transform_2, window_bounds = array<i64: 1, 64>}, {pipeline_mode = #tpu.pipeline_mode<synchronous>, transform_indices = @transform_3, window_bounds = array<i64: 1, 64>}, {transform_indices = @transform_4, window_bounds = array<i64: 1, 1>}]} {
    %c0 = arith.constant 0 : index
    %c0_0 = arith.constant 0 : index
    %0 = vector.load %arg1[%c0, %c0_0] : memref<16x128xf32, #tpu.memory_space<vmem>>, vector<16x128xf32>
    %c0_1 = arith.constant 0 : index
    %c0_2 = arith.constant 0 : index
    %1 = vector.load %arg2[%c0_1, %c0_2] : memref<16x128xf32, #tpu.memory_space<vmem>>, vector<16x128xf32>
    %2 = math.log %1 : vector<16x128xf32>
    %cst = arith.constant -1.000000e+02 : f32
    %3 = vector.broadcast %cst : f32 to vector<16x128xf32>
    %4 = arith.maximumf %2, %3 : vector<16x128xf32>
    %cst_3 = arith.constant 1.000000e+00 : f32
    %5 = vector.broadcast %cst_3 : f32 to vector<16x128xf32>
    %6 = arith.subf %5, %1 : vector<16x128xf32>
    %7 = math.log %6 : vector<16x128xf32>
    %cst_4 = arith.constant -1.000000e+02 : f32
    %8 = vector.broadcast %cst_4 : f32 to vector<16x128xf32>
    %9 = arith.maximumf %7, %8 : vector<16x128xf32>
    %10 = arith.subf %4, %9 : vector<16x128xf32>
    %11 = arith.mulf %0, %10 : vector<16x128xf32>
    %12 = arith.addf %9, %11 : vector<16x128xf32>
    %13 = vector.shape_cast %12 : vector<16x128xf32> to vector<2x8x128xf32>
    %cst_5 = arith.constant dense<0.000000e+00> : vector<8x128xf32>
    %14 = vector.multi_reduction <add>, %13, %cst_5 [0] : vector<2x8x128xf32> to vector<8x128xf32>
    %c0_i32 = arith.constant 0 : i32
    %15 = arith.cmpi eq, %arg0, %c0_i32 : i32
    %16 = arith.extui %15 : i1 to i32
    %c0_i32_6 = arith.constant 0 : i32
    %17 = arith.cmpi ne, %16, %c0_i32_6 : i32
    scf.if %17 {
      %c0_11 = arith.constant 0 : index
      %c0_12 = arith.constant 0 : index
      %24 = vector.load %arg6[%c0_11, %c0_12] : memref<8x128xf32, #tpu.memory_space<vmem>>, vector<8x128xf32>
      tpu.vector_store %arg6[%c0_11, %c0_12], %14 {strides = array<i32>} : memref<8x128xf32, #tpu.memory_space<vmem>>, vector<8x128xf32>,
    } else {
    }
    %c0_i32_7 = arith.constant 0 : i32
    %18 = arith.cmpi sgt, %arg0, %c0_i32_7 : i32
    %19 = arith.extui %18 : i1 to i32
    %c0_i32_8 = arith.constant 0 : i32
    %20 = arith.cmpi ne, %19, %c0_i32_8 : i32
    scf.if %20 {
      %c0_11 = arith.constant 0 : index
      %c0_12 = arith.constant 0 : index
      %24 = vector.load %arg6[%c0_11, %c0_12] : memref<8x128xf32, #tpu.memory_space<vmem>>, vector<8x128xf32>
      %25 = arith.addf %24, %14 : vector<8x128xf32>
      %c0_13 = arith.constant 0 : index
      %c0_14 = arith.constant 0 : index
      %26 = vector.load %arg6[%c0_13, %c0_14] : memref<8x128xf32, #tpu.memory_space<vmem>>, vector<8x128xf32>
      tpu.vector_store %arg6[%c0_13, %c0_14], %25 {strides = array<i32>} : memref<8x128xf32, #tpu.memory_space<vmem>>, vector<8x128xf32>,
    } else {
    }
    %c0_i32_9 = arith.constant 0 : i32
    %21 = arith.cmpi eq, %arg0, %c0_i32_9 : i32
    %22 = arith.extui %21 : i1 to i32
    %c0_i32_10 = arith.constant 0 : i32
    %23 = arith.cmpi ne, %22, %c0_i32_10 : i32
    scf.if %23 {
      %c0_11 = arith.constant 0 : index
      %c0_12 = arith.constant 0 : index
      %24 = vector.load %arg3[%c0_11, %c0_12] : memref<1x64xf32, #tpu.memory_space<vmem>>, vector<1x64xf32>
      %c0_13 = arith.constant 0 : index
      %c0_14 = arith.constant 0 : index
      %25 = vector.load %arg4[%c0_13, %c0_14] : memref<1x64xf32, #tpu.memory_space<vmem>>, vector<1x64xf32>
      %26 = math.exp %25 : vector<1x64xf32>
      %27 = arith.subf %26, %25 : vector<1x64xf32>
      %28 = arith.mulf %24, %24 : vector<1x64xf32>
      %29 = arith.addf %27, %28 : vector<1x64xf32>
      %cst_15 = arith.constant 1.000000e+00 : f32
      %30 = vector.broadcast %cst_15 : f32 to vector<1x64xf32>
      %31 = arith.subf %29, %30 : vector<1x64xf32>
      %32 = vector.shape_cast %31 : vector<1x64xf32> to vector<1x1x64xf32>
      %cst_16 = arith.constant dense<0.000000e+00> : vector<1xf32>
      %33 = vector.multi_reduction <add>, %32, %cst_16 [1, 2] : vector<1x1x64xf32> to vector<1xf32>
      %34 = vector.shape_cast %33 : vector<1xf32> to vector<1x1x1xf32>
      %35 = vector.extract %34[0, 0, 0] : f32 from vector<1x1x1xf32>
      %cst_17 = arith.constant 5.000000e-01 : f32
      %36 = arith.mulf %cst_17, %35 : f32
      %c0_18 = arith.constant 0 : index
      %c0_19 = arith.constant 0 : index
      %37 = vector.load %arg6[%c0_18, %c0_19] : memref<8x128xf32, #tpu.memory_space<vmem>>, vector<8x128xf32>
      %38 = vector.shape_cast %37 : vector<8x128xf32> to vector<1x8x128xf32>
      %cst_20 = arith.constant dense<0.000000e+00> : vector<1xf32>
      %39 = vector.multi_reduction <add>, %38, %cst_20 [1, 2] : vector<1x8x128xf32> to vector<1xf32>
      %40 = vector.shape_cast %39 : vector<1xf32> to vector<1x1x1xf32>
      %41 = vector.extract %40[0, 0, 0] : f32 from vector<1x1x1xf32>
      %42 = arith.subf %36, %41 : f32
      %c0_21 = arith.constant 0 : index
      %c0_22 = arith.constant 0 : index
      %43 = memref.load %arg5[%c0_21, %c0_22] : memref<1x1xf32, #tpu.memory_space<smem>>
      memref.store %42, %arg5[%c0_21, %c0_22] : memref<1x1xf32, #tpu.memory_space<smem>>
    } else {
    }
    return
  }
  func.func @transform_0(%arg0: i32) -> (i32, i32) {
    %c0_i32 = arith.constant 0 : i32
    %c0_i32_0 = arith.constant 0 : i32
    return %arg0, %c0_i32 : i32, i32
  }
  func.func @transform_1(%arg0: i32) -> (i32, i32) {
    %c0_i32 = arith.constant 0 : i32
    %c0_i32_0 = arith.constant 0 : i32
    return %arg0, %c0_i32 : i32, i32
  }
  func.func @transform_2(%arg0: i32) -> (i32, i32) {
    %c0_i32 = arith.constant 0 : i32
    %c0_i32_0 = arith.constant 0 : i32
    %c0_i32_1 = arith.constant 0 : i32
    return %c0_i32, %c0_i32_0 : i32, i32
  }
  func.func @transform_3(%arg0: i32) -> (i32, i32) {
    %c0_i32 = arith.constant 0 : i32
    %c0_i32_0 = arith.constant 0 : i32
    %c0_i32_1 = arith.constant 0 : i32
    return %c0_i32, %c0_i32_0 : i32, i32
  }
  func.func @transform_4(%arg0: i32) -> (i32, i32) {
    %c0_i32 = arith.constant 0 : i32
    %c0_i32_0 = arith.constant 0 : i32
    %c0_i32_1 = arith.constant 0 : i32
    return %c0_i32, %c0_i32_0 : i32, i32
  }
}

</mosaic_0001>

<bundles_post_ra>
// kernel: tpu_custom_call.1
= control target key start
LH: loop header
LB: loop body
LE: loop exit
PB: predicated region body
PF: predicated region fallthrough
CT: control target
= control target key end

     0   :  { %9 = vsyncpa [#allocation4], 0  ;;  %s286_s0 = inlined_call_operand.hbm [shape: f32[16,128], index: 0, kind: input, shape index: {}]   ;;  %s287_s1 = inlined_call_operand.hbm [shape: f32[16,128], index: 1, kind: input, shape index: {}]   ;;  %s288_s2 = inlined_call_operand.vmem [shape: f32[1,64], index: 2, kind: input, shape index: {}]   ;;  %s289_s3 = inlined_call_operand.vmem [shape: f32[1,64], index: 3, kind: input, shape index: {}]   ;;  %s290_s4 = inlined_call_operand.hbm [shape: f32[1,1], index: 4, kind: output, shape index: {}]  }
   0x1   :  { %10 = vsyncpa [#allocation7], 0 }
   0x2   :  { %11 = vsyncpa [#allocation5], 0  ;;  %s214_s15 = smov [#allocation3]   ;;  %s154_s19 = scalar_lea.hbm %s286_s0, 256 }
   0x3   :  { %s17_s16 = sshll.u32 %s214_s15, 4  ;;  %p155_p0 = scmp.ne.s32.totalorder %s286_s0, %s154_s19  ;;  %s18_s16 = int_to_ptr.vmem [resolvable:$true] %s17_s16 }
   0x4   :  { %p158_p1 = scmp.lt.u32.totalorder %s154_s19, %s286_s0 }
   0x6   :  { %p160_p2 = pnand %p158_p1, %p155_p0 }
   0x8   :  { %163 = shalt.err (!%p160_p2)
}
   0x9   :  { %s164_s24 = scalar_lea.vmem %s18_s16, 256  ;;  %p169_p4 = scmp.lt.s32.totalorder %s18_s16, %s18_s16 }
   0xa   :  { %p165_p3 = scmp.ne.s32.totalorder %s18_s16, %s164_s24  ;;  %p170_p5 = scmp.lt.s32.totalorder %s164_s24, %s164_s24 }
   0xc   :  { %p171_p6 = por %p170_p5, %p169_p4 }
   0xe   :  { %p172_p7 = pnand %p171_p6, %p165_p3 }
  0x10   :  { %175 = shalt.err (!%p172_p7)
}
  0x11   :  { %s215_s25 = smov 128   ;;  %s216_s26 = smov 8  }
  0x12   :  { %23 = dma.hbm_to_vmem [thread:$0]  %s286_s0, 256, %s18_s16, [#allocation4], %s215_s25, %s215_s25, %s216_s26  }
  0x13   :  { %s217_s29 = smov [#allocation6]   ;;  %s176_s7 = scalar_lea.hbm %s287_s1, 256 }
  0x14   :  { %s29_s30 = sshll.u32 %s217_s29, 4  ;;  %p177_p8 = scmp.ne.s32.totalorder %s287_s1, %s176_s7  ;;  %s30_s30 = int_to_ptr.vmem [resolvable:$true] %s29_s30 }
  0x15   :  { %p180_p9 = scmp.lt.u32.totalorder %s176_s7, %s287_s1 }
  0x17   :  { %p182_p10 = pnand %p180_p9, %p177_p8 }
  0x19   :  { %185 = shalt.err (!%p182_p10)
}
  0x1a   :  { %s186_s12 = scalar_lea.vmem %s30_s30, 256  ;;  %p191_p12 = scmp.lt.s32.totalorder %s30_s30, %s30_s30 }
  0x1b   :  { %p187_p11 = scmp.ne.s32.totalorder %s30_s30, %s186_s12  ;;  %p192_p13 = scmp.lt.s32.totalorder %s186_s12, %s186_s12 }
  0x1d   :  { %p193_p0 = por %p192_p13, %p191_p12 }
  0x1f   :  { %p194_p1 = pnand %p193_p0, %p187_p11 }
  0x21   :  { %197 = shalt.err (!%p194_p1)
}
  0x22   :  { %35 = dma.hbm_to_vmem [thread:$0]  %s287_s1, 256, %s30_s30, [#allocation7], %s215_s25, %s215_s25, %s216_s26  }
  0x23   :  { %208 = dma.done.wait [#allocation4], 256  }
  0x24   :  { %209 = vsyncadd [#allocation4], 4294967040 }
  0x25   :  { %210 = dma.done.wait [#allocation7], 256  }
  0x26   :  { %211 = vsyncadd [#allocation7], 4294967040  ;;  %v87_v0 = vld [vmem:[%s289_s3] sm:$0x1]  ;;  %v48_v2 = vld [vmem:[#allocation6] sm:$0xff]  ;;  %vm94_vm0 = vcmask 516096  }
  0x27   :  { %v88_v1 = vmul.f32 1.442695, %v87_v0  ;;  %v49_v3 = vld [vmem:[#allocation6 + $0x8] sm:$0xff]  ;;  %144 = vlog2.f32 %v48_v2  ;;  %v56_v4 = vsub.f32 1.0, %v48_v2  ;;  %v86_v6 = vld [vmem:[%s288_s2] sm:$0x1] }
  0x28   :  { %v57_v5 = vsub.f32 1.0, %v49_v3  ;;  %v91_v8 = vmul.f32 %v86_v6, %v86_v6  ;;  %v46_v23 = vld [vmem:[#allocation3] sm:$0xff]  ;;  %v47_v26 = vld [vmem:[#allocation3 + $0x8] sm:$0xff]  ;;  %s198_s21 = scalar_lea.hbm %s290_s4, 16 }
  0x29   :  { %146 = vpow2.f32 %v88_v1  ;;  %p199_p2 = scmp.ne.s32.totalorder %s290_s4, %s198_s21  ;;  %p202_p3 = scmp.lt.u32.totalorder %s198_s21, %s290_s4 }
  0x2a   :  { %148 = vlog2.f32 %v49_v3 }
  0x2b   :  { %150 = vlog2.f32 %v56_v4  ;;  %p204_p4 = pnand %p202_p3, %p199_p2 }
  0x2c   :  { %152 = vlog2.f32 %v57_v5 }
  0x31   :  { %v145_v7 = vpop.eup %144 }
  0x32   :  { %v51_v10 = vmul.f32 0.6931472, %v145_v7 }
  0x33   :  { %v147_v9 = vpop.eup %146 }
  0x34   :  { %v149_v11 = vpop.eup %148  ;;  %v90_v12 = vsub.f32 %v147_v9, %v87_v0  ;;  %v54_v17 = vmax.f32 %v51_v10, -100.0 }
  0x35   :  { %v151_v13 = vpop.eup %150  ;;  %v53_v14 = vmul.f32 0.6931472, %v149_v11 }
  0x36   :  { %v153_v15 = vpop.eup %152  ;;  %v92_v16 = vadd.f32 %v91_v8, %v90_v12  ;;  %v59_v18 = vmul.f32 0.6931472, %v151_v13 }
  0x37   :  { %v55_v19 = vmax.f32 %v53_v14, -100.0  ;;  %v61_v20 = vmul.f32 0.6931472, %v153_v15 }
  0x38   :  { %v134_v21 = vadd.f32 -1.0, %v92_v16  ;;  %v62_v22 = vmax.f32 %v59_v18, -100.0 }
  0x39   :  { %v63_v24 = vmax.f32 %v61_v20, -100.0 }
  0x3a   :  { %v95_v25 = vsel %vm94_vm0, %v134_v21, 0.0  ;;  %v64_v27 = vsub.f32 %v54_v17, %v62_v22 }
  0x3b   :  { %96 = vadd.xlane.f32.xlu0 %v95_v25  ;;  %v65_v28 = vsub.f32 %v55_v19, %v63_v24 }
  0x3c   :  { %v66_v29 = vmul.f32 %v64_v27, %v46_v23 }
  0x3d   :  { %v67_v30 = vmul.f32 %v65_v28, %v47_v26 }
  0x3e   :  { %v68_v31 = vadd.f32 %v66_v29, %v62_v22 }
  0x3f   :  { %v69_v32 = vadd.f32 %v67_v30, %v63_v24 }
  0x41   :  { %v70_v33 = vadd.f32 %v69_v32, %v68_v31 }
  0x43   :  { %107 = vadd.xlane.f32.xlu0 %v70_v33 }
  0xc8   :  { %v97_v34 = vpop.xlane.xlu0 %96 }
  0xc9   :  { %v98_v35 = vrot.slane %v97_v34, 4 }
  0xcb   :  { %v99_v36 = vadd.f32 %v98_v35, %v97_v34 }
  0xcd   :  { %v100_v37 = vrot.slane %v99_v36, 2 }
  0xcf   :  { %v101_v38 = vadd.f32 %v100_v37, %v99_v36 }
  0xd0   :  { %v108_v39 = vpop.xlane.xlu0 %107 }
  0xd1   :  { %v109_v40 = vrot.slane %v108_v39, 4  ;;  %v102_v41 = vrot.slane %v101_v38, 1 }
  0xd3   :  { %v110_v42 = vadd.f32 %v109_v40, %v108_v39  ;;  %v103_v43 = vadd.f32 %v102_v41, %v101_v38 }
  0xd5   :  { %v111_v44 = vrot.slane %v110_v42, 2  ;;  %135 = vpush %v103_v43 }
  0xd7   :  { %v112_v45 = vadd.f32 %v111_v44, %v110_v42 }
  0xd9   :  { %v113_v46 = vrot.slane %v112_v45, 1 }
  0xdb   :  { %v114_v47 = vadd.f32 %v113_v46, %v112_v45 }
  0xdd   :  { %137 = vpush %v114_v47 }
 0x106   :  { %s136_s2 = spop %135 }
 0x107   :  { %s105_s3 = smul.f32 0.5, %s136_s2 }
 0x10e   :  { %s138_s17 = spop %137 }
 0x10f   :  { %s116_s18 = ssub.f32 %s105_s3, %s138_s17 }
 0x111   :  { %118 = sst [smem:[#allocation8]] %s116_s18 }
 0x112   :  { %207 = shalt.err (!%p204_p4)
}
 0x113   :  { %s218_s26 = smov [#allocation8]  }
 0x114   :  { %126 = dma.smem_to_hbm %s218_s26, 16, %s290_s4, [#allocation5]  }
 0x115   :  { %212 = dma.done.wait [#allocation5], 16  }
 0x116   :  { %213 = vsyncadd [#allocation5], 4294967280 }
 0x117   :  { %130 = sfence }
 0x118   :  { %131 = vsyncpa [#allocation4], 1 }
 0x119   :  { %132 = vsyncpa [#allocation7], 1 }
 0x11a   :  { %133 = vsyncpa [#allocation5], 1 }

</bundles_post_ra>
